<compile_context>
chip_gen: v7x
topology: tpu7x:2x2x1
jax: 0.10.0
libtpu: 0.0.40
codegen_flags: <defaults>
</compile_context>

<pallas_src>
import jax
import jax.numpy as jnp
from jax.experimental import pallas as pl
from jax.experimental.pallas import tpu as pltpu

NUM_CLASSES = 9
IMG_FEATS = 1000          # timm default classifier width (spec: 1000 + 128 -> 9)
IMG_FEATS_PAD = 1024      # lane/MXU-aligned image-feature width
CSV_IN = 9
CSV_H1 = 250
CSV_H1_PAD = 256          # lane-align the 250-wide hidden layer
CSV_H2 = 128
OUT_PAD = 128             # lane-dense classifier output (sliced back to 9)
BN_EPS = 1e-5             # PyTorch BatchNorm1d default


# --------------------------------------------------------------------------- #
# kernel
# --------------------------------------------------------------------------- #
def _fused_kernel(img_ref, csv_ref, w1_ref, b1_ref, w2_ref, b2_ref,
                  wi_ref, wc_ref, bc_ref, o_ref):
    # img_ref: (bt, 1024) bf16    csv_ref: (bt, 9) f32
    # csv branch (BatchNorm folded into the linears; Dropout == identity in eval)
    h1 = jnp.dot(csv_ref[...], w1_ref[...],
                 preferred_element_type=jnp.float32) + b1_ref[...]
    h1 = h1 * jax.nn.sigmoid(h1)                       # Swish  (bt, 256)
    h2 = jnp.dot(h1, w2_ref[...],
                 preferred_element_type=jnp.float32) + b2_ref[...]
    h2 = h2 * jax.nn.sigmoid(h2)                       # Swish  (bt, 128)

    # classification over concat(img, csv_feat) as a split matmul (no concat).
    # bf16 operands + f32 accumulation = native MXU path on all generations.
    logits = jnp.dot(img_ref[...], wi_ref[...],
                     preferred_element_type=jnp.float32)
    logits = logits + jnp.dot(h2.astype(jnp.bfloat16), wc_ref[...],
                              preferred_element_type=jnp.float32)
    logits = logits + bc_ref[...]
    o_ref[...] = logits.astype(o_ref.dtype)            # (bt, 128) lane-dense


# --------------------------------------------------------------------------- #
# one-time parameter preparation (host-side)
# --------------------------------------------------------------------------- #
def _fold_bn(w_t, b, gamma, beta, mean, var, eps=BN_EPS):
    """Fold inference BatchNorm1d into the preceding Linear. w_t: (in, out)."""
    s = gamma / jnp.sqrt(var + eps)
    return w_t * s[None, :], (b - mean) * s + beta


def _pad_axis(x, target, axis):
    pad = target - x.shape[axis]
    if pad <= 0:
        return x
    widths = [(0, 0)] * x.ndim
    widths[axis] = (0, pad)
    return jnp.pad(x, widths)


def prepare_params(params):
    """One-time prep: fold BN into the linears, transpose to (in, out), pad to
    lane-aligned shapes, bf16-cast the big classifier weights. Call once and
    reuse the result across forward calls."""
    w1f, b1f = _fold_bn(params["csv_w1"].T, params["csv_b1"],
                        params["bn1_gamma"], params["bn1_beta"],
                        params["bn1_mean"], params["bn1_var"])        # (9, 250)
    w2f, b2f = _fold_bn(params["csv_w2"].T, params["csv_b2"],
                        params["bn2_gamma"], params["bn2_beta"],
                        params["bn2_mean"], params["bn2_var"])        # (250, 128)

    w1f = _pad_axis(w1f, CSV_H1_PAD, 1)                               # (9, 256)
    b1f = _pad_axis(b1f.reshape(1, -1), CSV_H1_PAD, 1)                # (1, 256)
    w2f = _pad_axis(w2f, CSV_H1_PAD, 0)                               # (256, 128)
    b2f = b2f.reshape(1, -1)                                          # (1, 128)

    w_cls = params["cls_w"]                                           # (9, 1128)
    wi = _pad_axis(_pad_axis(w_cls[:, :IMG_FEATS].T, OUT_PAD, 1),
                   IMG_FEATS_PAD, 0).astype(jnp.bfloat16)             # (1024, 128)
    wc = _pad_axis(w_cls[:, IMG_FEATS:].T, OUT_PAD, 1).astype(jnp.bfloat16)  # (128, 128)
    bc = _pad_axis(params["cls_b"].reshape(1, -1), OUT_PAD, 1)        # (1, 128)

    return {
        "w1": w1f.astype(jnp.float32), "b1": b1f.astype(jnp.float32),
        "w2": w2f.astype(jnp.float32), "b2": b2f.astype(jnp.float32),
        "wi": wi, "wc": wc, "bc": bc.astype(jnp.float32),
    }


# --------------------------------------------------------------------------- #
# forward
# --------------------------------------------------------------------------- #
def _choose_batch_tiling(B, batch_tile):
    """Pick a multiple-of-8 batch tile, preferring one that divides B exactly
    (no wrapper-side batch padding) and yields >=2 grid steps (v7x megacore)."""
    limit = max(8, min(batch_tile, B))
    divisors = [t for t in range(8, limit + 1, 8) if B % t == 0]
    if divisors:
        two_step = [t for t in divisors if B // t >= 2]
        bt = max(two_step) if two_step else max(divisors)
        return bt, B
    # ragged batch fallback: pad the final partial tile.
    bt = max(8, (limit // 8) * 8)
    return bt, pl.cdiv(B, bt) * bt


def efficient_network_forward(img_feats, csv_data, prepared, *, batch_tile=512):
    """EfficientNetwork forward *after* the timm backbone.

    img_feats: (B, 1024) bf16 backbone output (zero-padded 1000->1024);
               (B, 1000) also accepted (padded here — one extra HBM pass).
    csv_data : (B, 9)
    prepared : output of prepare_params().
    """
    B = img_feats.shape[0]
    if img_feats.shape[1] == IMG_FEATS:
        img_feats = _pad_axis(img_feats, IMG_FEATS_PAD, 1)
    img_feats = img_feats.astype(jnp.bfloat16)
    csv_data = csv_data.astype(jnp.float32)

    bt, B_pad = _choose_batch_tiling(B, batch_tile)
    if B_pad != B:
        img_feats = _pad_axis(img_feats, B_pad, 0)
        csv_data = _pad_axis(csv_data, B_pad, 0)

    out = pl.pallas_call(
        _fused_kernel,
        out_shape=jax.ShapeDtypeStruct((B_pad, OUT_PAD), jnp.float32),
        grid_spec=pltpu.PrefetchScalarGridSpec(
            num_scalar_prefetch=0,
            grid=(B_pad // bt,),
            in_specs=[
                pl.BlockSpec((bt, IMG_FEATS_PAD), lambda i: (i, 0)),       # img tile (bf16)
                pl.BlockSpec((bt, CSV_IN), lambda i: (i, 0)),              # csv tile (full 9 lanes)
                pl.BlockSpec((CSV_IN, CSV_H1_PAD), lambda i: (0, 0)),      # w1 (BN folded)
                pl.BlockSpec((1, CSV_H1_PAD), lambda i: (0, 0)),           # b1
                pl.BlockSpec((CSV_H1_PAD, CSV_H2), lambda i: (0, 0)),      # w2 (BN folded)
                pl.BlockSpec((1, CSV_H2), lambda i: (0, 0)),               # b2
                pl.BlockSpec((IMG_FEATS_PAD, OUT_PAD), lambda i: (0, 0)),  # wi (bf16)
                pl.BlockSpec((CSV_H2, OUT_PAD), lambda i: (0, 0)),         # wc (bf16)
                pl.BlockSpec((1, OUT_PAD), lambda i: (0, 0)),              # bc
            ],
            out_specs=pl.BlockSpec((bt, OUT_PAD), lambda i: (i, 0)),
        ),
        compiler_params=pltpu.CompilerParams(
            dimension_semantics=("parallel",),     # v7x megacore shards batch
        ),
    )(img_feats, csv_data,
      prepared["w1"], prepared["b1"], prepared["w2"], prepared["b2"],
      prepared["wi"], prepared["wc"], prepared["bc"])

    return out[:B, :NUM_CLASSES]


# --------------------------------------------------------------------------- #
# pure-JAX reference (matches the PyTorch module in eval mode)
# --------------------------------------------------------------------------- #
def _reference(img_feats_f32, csv_data, p):
    hp = jax.lax.Precision.HIGHEST
    x = jnp.dot(csv_data, p["csv_w1"].T, precision=hp) + p["csv_b1"]
    x = (x - p["bn1_mean"]) / jnp.sqrt(p["bn1_var"] + BN_EPS) * p["bn1_gamma"] + p["bn1_beta"]
    x = x * jax.nn.sigmoid(x)
    x = jnp.dot(x, p["csv_w2"].T, precision=hp) + p["csv_b2"]
    x = (x - p["bn2_mean"]) / jnp.sqrt(p["bn2_var"] + BN_EPS) * p["bn2_gamma"] + p["bn2_beta"]
    x = x * jax.nn.sigmoid(x)
    cat = jnp.concatenate([img_feats_f32, x], axis=1)
    return jnp.dot(cat, p["cls_w"].T, precision=hp) + p["cls_b"]


if __name__ == "__main__":
    key = jax.random.PRNGKey(0)
    ks = jax.random.split(key, 16)

    B = 16
    img_feats = jax.random.normal(ks[0], (B, IMG_FEATS), dtype=jnp.float32)
    csv_data = jax.random.normal(ks[1], (B, CSV_IN), dtype=jnp.float32)

    params = {
        # csv head: Linear(9,250) + BN(250), Linear(250,128) + BN(128)
        "csv_w1": jax.random.normal(ks[2], (CSV_H1, CSV_IN), jnp.float32) * 0.1,
        "csv_b1": jax.random.normal(ks[3], (CSV_H1,), jnp.float32) * 0.01,
        "bn1_gamma": 1.0 + 0.1 * jax.random.normal(ks[4], (CSV_H1,), jnp.float32),
        "bn1_beta": 0.1 * jax.random.normal(ks[5], (CSV_H1,), jnp.float32),
        "bn1_mean": 0.1 * jax.random.normal(ks[6], (CSV_H1,), jnp.float32),
        "bn1_var": 0.5 + 0.2 * jnp.abs(jax.random.normal(ks[7], (CSV_H1,), jnp.float32)),
        "csv_w2": jax.random.normal(ks[8], (CSV_H2, CSV_H1), jnp.float32) * 0.05,
        "csv_b2": jax.random.normal(ks[9], (CSV_H2,), jnp.float32) * 0.01,
        "bn2_gamma": 1.0 + 0.1 * jax.random.normal(ks[10], (CSV_H2,), jnp.float32),
        "bn2_beta": 0.1 * jax.random.normal(ks[11], (CSV_H2,), jnp.float32),
        "bn2_mean": 0.1 * jax.random.normal(ks[12], (CSV_H2,), jnp.float32),
        "bn2_var": 0.5 + 0.2 * jnp.abs(jax.random.normal(ks[13], (CSV_H2,), jnp.float32)),
        # classification: Linear(1000 + 128, 9)
        "cls_w": jax.random.normal(ks[14], (NUM_CLASSES, IMG_FEATS + CSV_H2), jnp.float32) * 0.02,
        "cls_b": jax.random.normal(ks[15], (NUM_CLASSES,), jnp.float32) * 0.01,
    }

    # one-time parameter prep (BN fold + pad + bf16) — outside the forward.
    prepared = prepare_params(params)
    prepared = jax.tree_util.tree_map(jax.block_until_ready, prepared)

    # simulate the backbone emitting lane-aligned bf16 features directly
    # (no extra pad/cast pass inside the forward).
    img_backbone = _pad_axis(img_feats, IMG_FEATS_PAD, 1).astype(jnp.bfloat16)

    out = efficient_network_forward(img_backbone, csv_data, prepared)
    out = jax.block_until_ready(out)

    ref = _reference(img_feats.astype(jnp.bfloat16).astype(jnp.float32),
                     csv_data, params)

    assert out.shape == (B, NUM_CLASSES)
    assert jnp.allclose(out, ref, atol=1e-2, rtol=1e-2), float(jnp.max(jnp.abs(out - ref)))

    print("KERNEL_OK")
</pallas_src>

<mosaic_0001>
module attributes {stable_mosaic.version = 11 : i64} {
  func.func @_fused_kernel(%arg0: i32, %arg1: memref<8x1024xbf16, #tpu.memory_space<vmem>>, %arg2: memref<8x9xf32, #tpu.memory_space<vmem>>, %arg3: memref<9x256xf32, #tpu.memory_space<vmem>>, %arg4: memref<1x256xf32, #tpu.memory_space<vmem>>, %arg5: memref<256x128xf32, #tpu.memory_space<vmem>>, %arg6: memref<1x128xf32, #tpu.memory_space<vmem>>, %arg7: memref<1024x128xbf16, #tpu.memory_space<vmem>>, %arg8: memref<128x128xbf16, #tpu.memory_space<vmem>>, %arg9: memref<1x128xf32, #tpu.memory_space<vmem>>, %arg10: memref<8x128xf32, #tpu.memory_space<vmem>>) attributes {dimension_semantics = [#tpu.dimension_semantics<parallel>], iteration_bounds = array<i64: 2>, scalar_prefetch = 0 : i64, scratch_operands = 0 : i64, tpu.core_type = #tpu.core_type<tc>, window_params = [{transform_indices = @transform_0, window_bounds = array<i64: 8, 1024>}, {transform_indices = @transform_1, window_bounds = array<i64: 8, 9>}, {pipeline_mode = #tpu.pipeline_mode<synchronous>, transform_indices = @transform_2, window_bounds = array<i64: 9, 256>}, {pipeline_mode = #tpu.pipeline_mode<synchronous>, transform_indices = @transform_3, window_bounds = array<i64: 1, 256>}, {pipeline_mode = #tpu.pipeline_mode<synchronous>, transform_indices = @transform_4, window_bounds = array<i64: 256, 128>}, {pipeline_mode = #tpu.pipeline_mode<synchronous>, transform_indices = @transform_5, window_bounds = array<i64: 1, 128>}, {pipeline_mode = #tpu.pipeline_mode<synchronous>, transform_indices = @transform_6, window_bounds = array<i64: 1024, 128>}, {pipeline_mode = #tpu.pipeline_mode<synchronous>, transform_indices = @transform_7, window_bounds = array<i64: 128, 128>}, {pipeline_mode = #tpu.pipeline_mode<synchronous>, transform_indices = @transform_8, window_bounds = array<i64: 1, 128>}, {transform_indices = @transform_9, window_bounds = array<i64: 8, 128>}]} {
    %c0 = arith.constant 0 : index
    %c0_0 = arith.constant 0 : index
    %0 = vector.load %arg2[%c0, %c0_0] : memref<8x9xf32, #tpu.memory_space<vmem>>, vector<8x9xf32>
    %c0_1 = arith.constant 0 : index
    %c0_2 = arith.constant 0 : index
    %1 = vector.load %arg3[%c0_1, %c0_2] : memref<9x256xf32, #tpu.memory_space<vmem>>, vector<9x256xf32>
    %cst = arith.constant dense<0.000000e+00> : vector<8x256xf32>
    %2 = tpu.matmul %0, %1, %cst {dimension_numbers = #tpu.dot_dimension_numbers<[1], [0], [0], [1], [0, 0, 1, 1], [], []>} : vector<8x9xf32>, vector<9x256xf32>, vector<8x256xf32> -> vector<8x256xf32>
    %c0_3 = arith.constant 0 : index
    %c0_4 = arith.constant 0 : index
    %3 = vector.load %arg4[%c0_3, %c0_4] : memref<1x256xf32, #tpu.memory_space<vmem>>, vector<1x256xf32>
    %4 = vector.broadcast %3 : vector<1x256xf32> to vector<8x256xf32>
    %5 = arith.addf %2, %4 : vector<8x256xf32>
    %6 = arith.negf %5 : vector<8x256xf32>
    %7 = math.exp %6 : vector<8x256xf32>
    %cst_5 = arith.constant 1.000000e+00 : f32
    %8 = vector.broadcast %cst_5 : f32 to vector<8x256xf32>
    %9 = arith.addf %8, %7 : vector<8x256xf32>
    %10 = arith.divf %8, %9 : vector<8x256xf32>
    %11 = arith.mulf %5, %10 : vector<8x256xf32>
    %c0_6 = arith.constant 0 : index
    %c0_7 = arith.constant 0 : index
    %12 = vector.load %arg5[%c0_6, %c0_7] : memref<256x128xf32, #tpu.memory_space<vmem>>, vector<256x128xf32>
    %cst_8 = arith.constant dense<0.000000e+00> : vector<8x128xf32>
    %13 = tpu.matmul %11, %12, %cst_8 {dimension_numbers = #tpu.dot_dimension_numbers<[1], [0], [0], [1], [0, 0, 1, 1], [], []>} : vector<8x256xf32>, vector<256x128xf32>, vector<8x128xf32> -> vector<8x128xf32>
    %c0_9 = arith.constant 0 : index
    %c0_10 = arith.constant 0 : index
    %14 = vector.load %arg6[%c0_9, %c0_10] : memref<1x128xf32, #tpu.memory_space<vmem>>, vector<1x128xf32>
    %15 = vector.broadcast %14 : vector<1x128xf32> to vector<8x128xf32>
    %16 = arith.addf %13, %15 : vector<8x128xf32>
    %17 = arith.negf %16 : vector<8x128xf32>
    %18 = math.exp %17 : vector<8x128xf32>
    %cst_11 = arith.constant 1.000000e+00 : f32
    %19 = vector.broadcast %cst_11 : f32 to vector<8x128xf32>
    %20 = arith.addf %19, %18 : vector<8x128xf32>
    %21 = arith.divf %19, %20 : vector<8x128xf32>
    %22 = arith.mulf %16, %21 : vector<8x128xf32>
    %c0_12 = arith.constant 0 : index
    %c0_13 = arith.constant 0 : index
    %23 = vector.load %arg1[%c0_12, %c0_13] : memref<8x1024xbf16, #tpu.memory_space<vmem>>, vector<8x1024xbf16>
    %c0_14 = arith.constant 0 : index
    %c0_15 = arith.constant 0 : index
    %24 = vector.load %arg7[%c0_14, %c0_15] : memref<1024x128xbf16, #tpu.memory_space<vmem>>, vector<1024x128xbf16>
    %cst_16 = arith.constant dense<0.000000e+00> : vector<8x128xf32>
    %25 = tpu.matmul %23, %24, %cst_16 {dimension_numbers = #tpu.dot_dimension_numbers<[1], [0], [0], [1], [0, 0, 1, 1], [], []>} : vector<8x1024xbf16>, vector<1024x128xbf16>, vector<8x128xf32> -> vector<8x128xf32>
    %26 = arith.truncf %22 : vector<8x128xf32> to vector<8x128xbf16>
    %c0_17 = arith.constant 0 : index
    %c0_18 = arith.constant 0 : index
    %27 = vector.load %arg8[%c0_17, %c0_18] : memref<128x128xbf16, #tpu.memory_space<vmem>>, vector<128x128xbf16>
    %cst_19 = arith.constant dense<0.000000e+00> : vector<8x128xf32>
    %28 = tpu.matmul %26, %27, %cst_19 {dimension_numbers = #tpu.dot_dimension_numbers<[1], [0], [0], [1], [0, 0, 1, 1], [], []>} : vector<8x128xbf16>, vector<128x128xbf16>, vector<8x128xf32> -> vector<8x128xf32>
    %29 = arith.addf %25, %28 : vector<8x128xf32>
    %c0_20 = arith.constant 0 : index
    %c0_21 = arith.constant 0 : index
    %30 = vector.load %arg9[%c0_20, %c0_21] : memref<1x128xf32, #tpu.memory_space<vmem>>, vector<1x128xf32>
    %31 = vector.broadcast %30 : vector<1x128xf32> to vector<8x128xf32>
    %32 = arith.addf %29, %31 : vector<8x128xf32>
    %c0_22 = arith.constant 0 : index
    %c0_23 = arith.constant 0 : index
    %33 = vector.load %arg10[%c0_22, %c0_23] : memref<8x128xf32, #tpu.memory_space<vmem>>, vector<8x128xf32>
    tpu.vector_store %arg10[%c0_22, %c0_23], %32 {strides = array<i32>} : memref<8x128xf32, #tpu.memory_space<vmem>>, vector<8x128xf32>,
    return
  }
  func.func @transform_0(%arg0: i32) -> (i32, i32) {
    %c0_i32 = arith.constant 0 : i32
    %c0_i32_0 = arith.constant 0 : i32
    return %arg0, %c0_i32 : i32, i32
  }
  func.func @transform_1(%arg0: i32) -> (i32, i32) {
    %c0_i32 = arith.constant 0 : i32
    %c0_i32_0 = arith.constant 0 : i32
    return %arg0, %c0_i32 : i32, i32
  }
  func.func @transform_2(%arg0: i32) -> (i32, i32) {
    %c0_i32 = arith.constant 0 : i32
    %c0_i32_0 = arith.constant 0 : i32
    %c0_i32_1 = arith.constant 0 : i32
    return %c0_i32, %c0_i32_0 : i32, i32
  }
  func.func @transform_3(%arg0: i32) -> (i32, i32) {
    %c0_i32 = arith.constant 0 : i32
    %c0_i32_0 = arith.constant 0 : i32
    %c0_i32_1 = arith.constant 0 : i32
    return %c0_i32, %c0_i32_0 : i32, i32
  }
  func.func @transform_4(%arg0: i32) -> (i32, i32) {
    %c0_i32 = arith.constant 0 : i32
    %c0_i32_0 = arith.constant 0 : i32
    %c0_i32_1 = arith.constant 0 : i32
    return %c0_i32, %c0_i32_0 : i32, i32
  }
  func.func @transform_5(%arg0: i32) -> (i32, i32) {
    %c0_i32 = arith.constant 0 : i32
    %c0_i32_0 = arith.constant 0 : i32
    %c0_i32_1 = arith.constant 0 : i32
    return %c0_i32, %c0_i32_0 : i32, i32
  }
  func.func @transform_6(%arg0: i32) -> (i32, i32) {
    %c0_i32 = arith.constant 0 : i32
    %c0_i32_0 = arith.constant 0 : i32
    %c0_i32_1 = arith.constant 0 : i32
    return %c0_i32, %c0_i32_0 : i32, i32
  }
  func.func @transform_7(%arg0: i32) -> (i32, i32) {
    %c0_i32 = arith.constant 0 : i32
    %c0_i32_0 = arith.constant 0 : i32
    %c0_i32_1 = arith.constant 0 : i32
    return %c0_i32, %c0_i32_0 : i32, i32
  }
  func.func @transform_8(%arg0: i32) -> (i32, i32) {
    %c0_i32 = arith.constant 0 : i32
    %c0_i32_0 = arith.constant 0 : i32
    %c0_i32_1 = arith.constant 0 : i32
    return %c0_i32, %c0_i32_0 : i32, i32
  }
  func.func @transform_9(%arg0: i32) -> (i32, i32) {
    %c0_i32 = arith.constant 0 : i32
    %c0_i32_0 = arith.constant 0 : i32
    return %arg0, %c0_i32 : i32, i32
  }
}

</mosaic_0001>

<bundles_post_ra>
// kernel: tpu_custom_call.1
= control target key start
LH: loop header
LB: loop body
LE: loop exit
PB: predicated region body
PF: predicated region fallthrough
CT: control target
= control target key end

     0   :  { %s2805_s0 = inlined_call_operand.hbm [shape: bf16[16,1024], index: 0, kind: input, shape index: {}]   ;;  %s2806_s1 = inlined_call_operand.hbm [shape: f32[16,9], index: 1, kind: input, shape index: {}]   ;;  %s2807_s2 = inlined_call_operand.hbm [shape: f32[9,256], index: 2, kind: input, shape index: {}]   ;;  %s2808_s3 = inlined_call_operand.vmem [shape: f32[1,256], index: 3, kind: input, shape index: {}]   ;;  %s2809_s4 = inlined_call_operand.hbm [shape: f32[256,128], index: 4, kind: input, shape index: {}]   ;;  %s2810_s5 = inlined_call_operand.vmem [shape: f32[1,128], index: 5, kind: input, shape index: {}]   ;;  %s2811_s6 = inlined_call_operand.hbm [shape: bf16[1024,128], index: 6, kind: input, shape index: {}]   ;;  %s2812_s7 = inlined_call_operand.hbm [shape: bf16[128,128], index: 7, kind: input, shape index: {}]   ;;  %s2813_s8 = inlined_call_operand.vmem [shape: f32[1,128], index: 8, kind: input, shape index: {}]   ;;  %s2814_s9 = inlined_call_operand.hbm [shape: f32[16,128], index: 9, kind: output, shape index: {}]  }
   0x1   :  { %2820 = sst [smem:[#allocation20_spill]] %s2805_s0 }
   0x2   :  { %2821 = sst [smem:[#allocation21_spill]] %s2807_s2 }
   0x3   :  { %2822 = sst [smem:[#allocation22_spill]] %s2809_s4 }
   0x4   :  { %2823 = sst [smem:[#allocation23_spill]] %s2811_s6 }
   0x5   :  { %2824 = sst [smem:[#allocation24_spill]] %s2814_s9 }
   0x6   :  { %14 = vsyncpa [#allocation3], 0 }
   0x7   :  { %16 = vsyncpa [#allocation3 + $0x1], 0 }
   0x8   :  { %17 = vsyncpa [#allocation6], 0 }
   0x9   :  { %19 = vsyncpa [#allocation6 + $0x1], 0 }
   0xa   :  { %20 = vsyncpa [#allocation9], 0 }
   0xb   :  { %21 = vsyncpa [#allocation12], 0 }
   0xc   :  { %22 = vsyncpa [#allocation4], 0 }
   0xd   :  { %24 = vsyncpa [#allocation4 + $0x1], 0  ;;  %s2455_s30 = smov 0   ;;  %s2457_s10 = smov 0  }
   0xe   :  { %s2459_s11 = smov 0   ;;  %s2461_s12 = smov 0  }
   0xf LB: > { %s2389_s13 = smov [#allocation7]   ;;  %s2476_s15 = sadd.s32 4294967295, %s2387_s12   ;;  %s2387_s12 = sphi %s2461_s12, %s2854_s12   ;;  %s2383_s11 = sphi %s2459_s11, %s2853_s11   ;;  %s2379_s10 = sphi %s2457_s10, %s2852_s10   ;;  %s2375_s30 = sphi %s2455_s30, %s2851_s30  }
  0x10   : > { %s272_s14 = sshll.u32 %s2389_s13, 4  ;;  %p1638_p0 = scmp.ge.s32.totalorder %s2387_s12, 1  ;;  %s2481_s14 = int_to_ptr.vmem [resolvable:$true] %s272_s14 }
  0x11   : > { %p2816_p1 = scmp.eq.s32.totalorder %s2476_s15, 0  ;;  %p260_p2 = scmp.lt.s32.totalorder %s2387_s12, 3 }
  0x12   : > { %s2390_s17 = smov [#allocation8]   ;;  %s2391_s20 = smov [#allocation10]  }
  0x13   : > { %p2483_p3 = pnand %p1638_p0, %p260_p2  ;;  %s288_s18 = sshll.u32 %s2390_s17, 4  ;;  %s2496_s18 = int_to_ptr.vmem [resolvable:$true] %s288_s18 }
  0x14   : > { %s2498_s21 = sshll.u32 %s2391_s20, 4  ;;  %s2827_s2 = sld [smem:[#allocation21_spill]]  ;;  %s305_s21 = int_to_ptr.vmem [resolvable:$true] %s2498_s21 }
  0x15   : > { %s2825_s16 = scalar_select %p2483_p3, 1, 0 }
  0x16   : > { %p1962_p5 = pneg %p2483_p3 }
  0x18   : > { %p2492_p6 = pnand %p1962_p5, %p2816_p1 }
  0x1a   : > { %s2133_s24 = scalar_lea.hbm %s2827_s2, 512  ;;  %p2508_p8 = pneg %p2492_p6 }
  0x1b   : > { %p2134_p7 = scmp.ne.s32.totalorder %s2827_s2, %s2133_s24  ;;  %p2140_p11 = scmp.lt.u32.totalorder %s2133_s24, %s2827_s2 }
  0x1d   : > { %p2136_p9 = pnand %p2508_p8, %p2134_p7 }
  0x1f   : > { %p2137_p10 = pneg %p2136_p9 }
  0x21   : > { %p2142_p12 = pnand %p2140_p11, %p2137_p10 }
  0x23   : > { %2145 = shalt.err (!%p2142_p12)
}
  0x24   : > { %s2146_s13 = scalar_lea.vmem %s2481_s14, 512  ;;  %p2154_p5 = scmp.lt.s32.totalorder %s2481_s14, %s2481_s14 }
  0x25   : > { %p2147_p13 = scmp.ne.s32.totalorder %s2481_s14, %s2146_s13  ;;  %p2155_p4 = scmp.lt.s32.totalorder %s2146_s13, %s2146_s13 }
  0x27   : > { %p2149_p0 = pnand %p2147_p13, %p2508_p8  ;;  %p2156_p7 = por %p2155_p4, %p2154_p5 }
  0x29   : > { %p2150_p2 = pneg %p2149_p0 }
  0x2b   : > { %p2157_p9 = pnand %p2156_p7, %p2150_p2 }
  0x2d   : > { %2160 = shalt.err (!%p2157_p9)
}
  0x2e   : > { %s2392_s17 = smov 256   ;;  %s2393_s20 = smov 16  }
  0x2f   : > { %1965 = dma.hbm_to_vmem [thread:$0]  (!%p2492_p6), %s2827_s2, 512, %s2481_s14, [#allocation6], %s2392_s17, %s2392_s17, %s2393_s20  }
  0x30   : > { %s2829_s4 = sld [smem:[#allocation22_spill]] }
  0x36   : > { %s2161_s26 = scalar_lea.hbm %s2829_s4, 4096 }
  0x37   : > { %p2162_p4 = scmp.ne.s32.totalorder %s2829_s4, %s2161_s26  ;;  %p2168_p12 = scmp.lt.u32.totalorder %s2161_s26, %s2829_s4 }
  0x39   : > { %p2164_p10 = pnand %p2162_p4, %p2508_p8 }
  0x3b   : > { %p2165_p11 = pneg %p2164_p10 }
  0x3d   : > { %p2170_p13 = pnand %p2168_p12, %p2165_p11 }
  0x3f   : > { %2173 = shalt.err (!%p2170_p13)
}
  0x40   : > { %s2174_s14 = scalar_lea.vmem %s2496_s18, 4096  ;;  %p2182_p7 = scmp.lt.s32.totalorder %s2496_s18, %s2496_s18 }
  0x41   : > { %p2175_p0 = scmp.ne.s32.totalorder %s2496_s18, %s2174_s14  ;;  %p2183_p9 = scmp.lt.s32.totalorder %s2174_s14, %s2174_s14 }
  0x43   : > { %p2177_p2 = pnand %p2175_p0, %p2508_p8  ;;  %p2184_p4 = por %p2183_p9, %p2182_p7 }
  0x45   : > { %p2178_p5 = pneg %p2177_p2 }
  0x47   : > { %p2185_p10 = pnand %p2184_p4, %p2178_p5 }
  0x49   : > { %2188 = shalt.err (!%p2185_p10)
}
  0x4a   : > { %s2394_s17 = smov 128   ;;  %s2395_s9 = smov 8  }
  0x4b   : > { %1968 = dma.hbm_to_vmem [thread:$0]  (!%p2492_p6), %s2829_s4, 4096, %s2496_s18, [#allocation9], %s2394_s17, %s2394_s17, %s2395_s9  }
  0x4c   : > { %s2830_s6 = sld [smem:[#allocation23_spill]] }
  0x52   : > { %s2189_s25 = scalar_lea.hbm %s2830_s6, 8192 }
  0x53   : > { %p2190_p11 = scmp.ne.s32.totalorder %s2830_s6, %s2189_s25  ;;  %p2196_p0 = scmp.lt.u32.totalorder %s2189_s25, %s2830_s6 }
  0x55   : > { %p2192_p12 = pnand %p2190_p11, %p2508_p8 }
  0x57   : > { %p2193_p13 = pneg %p2192_p12 }
  0x59   : > { %p2198_p2 = pnand %p2196_p0, %p2193_p13 }
  0x5b   : > { %2201 = shalt.err (!%p2198_p2)
}
  0x5c   : > { %s2202_s14 = scalar_lea.vmem %s305_s21, 8192  ;;  %p2210_p4 = scmp.lt.s32.totalorder %s305_s21, %s305_s21 }
  0x5d   : > { %p2203_p5 = scmp.ne.s32.totalorder %s305_s21, %s2202_s14  ;;  %p2211_p10 = scmp.lt.s32.totalorder %s2202_s14, %s2202_s14 }
  0x5f   : > { %p2205_p7 = pnand %p2203_p5, %p2508_p8  ;;  %p2212_p1 = por %p2211_p10, %p2210_p4 }
  0x61   : > { %p2206_p9 = pneg %p2205_p7 }
  0x63   : > { %p2213_p3 = pnand %p2212_p1, %p2206_p9 }
  0x65   : > { %2216 = shalt.err (!%p2213_p3)
}
  0x66   : > { %s2396_s18 = smov 64   ;;  %s2397_s17 = smov 4  }
  0x67   : > { %1971 = dma.hbm_to_vmem [thread:$0]  (!%p2492_p6), %s2830_s6, 8192, %s305_s21, [#allocation9], %s2396_s18, %s2396_s18, %s2397_s17  }
  0x68   : > { %s2398_s22 = smov [#allocation11]   ;;  %s2217_s26 = scalar_lea.hbm %s2812_s7, 1024 }
  0x69   : > { %s317_s23 = sshll.u32 %s2398_s22, 4  ;;  %p2218_p1 = scmp.ne.s32.totalorder %s2812_s7, %s2217_s26  ;;  %s318_s23 = int_to_ptr.vmem [resolvable:$true] %s317_s23 }
  0x6a   : > { %p2224_p12 = scmp.lt.u32.totalorder %s2217_s26, %s2812_s7 }
  0x6b   : > { %p2220_p3 = pnand %p2218_p1, %p2508_p8 }
  0x6d   : > { %p2221_p11 = pneg %p2220_p3 }
  0x6f   : > { %p2226_p13 = pnand %p2224_p12, %p2221_p11 }
  0x71   : > { %2229 = shalt.err (!%p2226_p13)
}
  0x72   : > { %s2230_s21 = scalar_lea.vmem %s318_s23, 1024  ;;  %p2238_p7 = scmp.lt.s32.totalorder %s318_s23, %s318_s23 }
  0x73   : > { %p2231_p0 = scmp.ne.s32.totalorder %s318_s23, %s2230_s21  ;;  %p2239_p9 = scmp.lt.s32.totalorder %s2230_s21, %s2230_s21 }
  0x75   : > { %p2233_p2 = pnand %p2231_p0, %p2508_p8  ;;  %p2240_p4 = por %p2239_p9, %p2238_p7 }
  0x77   : > { %p2234_p5 = pneg %p2233_p2 }
  0x79   : > { %p2241_p10 = pnand %p2240_p4, %p2234_p5 }
  0x7b   : > { %2244 = shalt.err (!%p2241_p10)
}
  0x7c   : > { %1974 = dma.hbm_to_vmem [thread:$0]  (!%p2492_p6), %s2812_s7, 1024, %s318_s23, [#allocation12], %s2396_s18, %s2396_s18, %s2397_s17  }
  0x7d   : > { %s1637_s27 = sadd.s32 4294967294, %s2387_s12   ;;  %s2591_s19 = sadd.s32 1, %s2387_s12  }
  0x7e   : > { %s34_s22 = ssub.s32 %s2387_s12, %s2591_s19  ;;  %s37_s24 = sadd.s32 1, %s2383_s11 }
  0x7f   : > { %p35_p8 = scmp.eq.s32.totalorder %s34_s22, 0  ;;  %p44_p1 = scmp.ne.s32.totalorder %s2383_s11, %s2379_s10 }
  0x80   : > { %p45_p3 = scmp.eq.s32.totalorder %s2387_s12, 0  ;;  %p50_p11 = scmp.ne.s32.totalorder %s2379_s10, %s2375_s30 }
  0x81   : > { %s2602_s25 = scalar_select %p35_p8, %s2383_s11, %s37_s24  }
  0x82   : > { %p2604_p12 = por %p45_p3, %p44_p1  ;;  %p2832_p13 = scmp.eq.s32.totalorder %s2476_s15, 0 }
  0x83   : > { %p247_p0 = scmp.eq.s32.totalorder %s2476_s15, 1  ;;  %p253_p2 = scmp.eq.s32.totalorder %s1637_s27, 1 }
  0x84   : > { %p2610_p6 = por %p2832_p13, %p50_p11  ;;  %p1990_p5 = scmp.lt.s32.totalorder %s2387_s12, 2 }
  0x85   : > { %s2617_s17 = sand.u32 1, %s2383_s11   ;;  %p2619_p7 = por %p247_p0, %p44_p1 }
  0x86   : > { %s2833_s18 = scalar_select %p2610_p6, 1, 0 }
  0x87   : > { %s2834_s23 = scalar_select %p2619_p7, 1, 0 }
  0x88   : > { %p2623_p9 = por %p253_p2, %p50_p11  ;;  %s1644_s29 = sshll.u32 %s2617_s17, 5 }
  0x89   : > { %s1749_s13 = sshll.u32 %s2387_s12, 9  ;;  %s2836_s0 = sld [smem:[#allocation20_spill]] }
  0x8a   : > { %s2835_s28 = scalar_select %p2623_p9, 1, 0 }
  0x8b   : > { %s338_s20 = scalar_lea.vmem [#allocation2], %s1644_s29  ;;  %p2638_p4 = pnand %p1990_p5, %p2604_p12 }
  0x8c   : > { %s346_s27 = sshll.u32 %s338_s20, 4  ;;  %s1647_s2 = sshll.u32 %s2617_s17, 3  ;;  %s2634_s27 = int_to_ptr.vmem [resolvable:$true] %s346_s27 }
  0x8d   : > { %s335_s14 = scalar_lea.sflag [#allocation3], %s2617_s17  ;;  %p2247_p8 = pneg %p2638_p4 }
  0x8f   : > { %s2632_s9 = scalar_lea.hbm %s2836_s0, %s1749_s13  ;;  %s2250_s26 = scalar_lea.hbm %s2836_s0, 1024 }
  0x90   : > { %s2245_s13 = scalar_lea.hbm %s2632_s9, 512  ;;  %p2251_p11 = scmp.lt.u32.totalorder %s2632_s9, %s2836_s0 }
  0x91   : > { %p2246_p10 = scmp.ne.s32.totalorder %s2632_s9, %s2245_s13  ;;  %p2252_p12 = scmp.lt.u32.totalorder %s2250_s26, %s2245_s13 }
  0x92   : > { %p2254_p0 = scmp.lt.u32.totalorder %s2245_s13, %s2632_s9 }
  0x93   : > { %p2248_p1 = pnand %p2247_p8, %p2246_p10  ;;  %p2253_p13 = por %p2252_p12, %p2251_p11 }
  0x95   : > { %p2249_p3 = pneg %p2248_p1  ;;  %p2255_p2 = por %p2254_p0, %p2253_p13 }
  0x97   : > { %p2256_p5 = pnand %p2255_p2, %p2249_p3 }
  0x99   : > { %2259 = shalt.err (!%p2256_p5)
}
  0x9a   : > { %s2260_s24 = scalar_lea.vmem %s2634_s27, 512  ;;  %s2399_s29 = smov [#allocation2]  }
  0x9b   : > { %p2261_p10 = scmp.ne.s32.totalorder %s2634_s27, %s2260_s24  ;;  %s2265_s21 = sshll.u32 %s2399_s29, 4  ;;  %s2266_s21 = int_to_ptr.vmem [resolvable:$false] %s2265_s21 }
  0x9c   : > { %s2267_s4 = scalar_lea.vmem %s2266_s21, 1024  ;;  %p2268_p7 = scmp.lt.s32.totalorder %s2634_s27, %s2266_s21 }
  0x9d   : > { %p2263_p1 = pnand %p2261_p10, %p2247_p8  ;;  %p2269_p11 = scmp.lt.s32.totalorder %s2267_s4, %s2260_s24 }
  0x9f   : > { %p2264_p9 = pneg %p2263_p1  ;;  %p2270_p12 = por %p2269_p11, %p2268_p7 }
  0xa1   : > { %p2271_p13 = pnand %p2270_p12, %p2264_p9 }
  0xa3   : > { %2274 = shalt.err (!%p2271_p13)
}
  0xa4   : > { %1978 = dma.hbm_to_vmem [thread:$0]  (!%p2638_p4), %s2632_s9, 512, %s2634_s27, %s335_s14  }
  0xa5   : > { %s1648_s13 = sshll.u32 %s2387_s12, 7  ;;  %s357_s24 = scalar_lea.vmem [#allocation5], %s1647_s2 }
  0xa6   : > { %s2674_s29 = scalar_lea.hbm %s2806_s1, %s1648_s13  ;;  %s364_s21 = sshll.u32 %s357_s24, 4  ;;  %s365_s21 = int_to_ptr.vmem [resolvable:$true] %s364_s21 }
  0xa7   : > { %s2838_s4 = sand.u32 1, %s2387_s12   ;;  %s2275_s6 = scalar_lea.hbm %s2674_s29, 128 }
  0xa8   : > { %s354_s0 = scalar_lea.sflag [#allocation6], %s2838_s4  ;;  %p2276_p7 = scmp.ne.s32.totalorder %s2674_s29, %s2275_s6 }
  0xa9   : > { %s2280_s14 = scalar_lea.hbm %s2806_s1, 256  ;;  %p2281_p0 = scmp.lt.u32.totalorder %s2674_s29, %s2806_s1 }
  0xaa   : > { %p2278_p9 = pnand %p2276_p7, %p2247_p8  ;;  %p2282_p2 = scmp.lt.u32.totalorder %s2280_s14, %s2275_s6 }
  0xab   : > { %p2284_p10 = scmp.lt.u32.totalorder %s2275_s6, %s2674_s29 }
  0xac   : > { %p2279_p3 = pneg %p2278_p9  ;;  %p2283_p5 = por %p2282_p2, %p2281_p0 }
  0xae   : > { %p2285_p1 = por %p2284_p10, %p2283_p5 }
  0xb0   : > { %p2286_p11 = pnand %p2285_p1, %p2279_p3 }
  0xb2   : > { %2289 = shalt.err (!%p2286_p11)
}
  0xb3   : > { %s2290_s2 = scalar_lea.vmem %s365_s21, 128  ;;  %s2400_s26 = smov [#allocation5]  }
  0xb4   : > { %p2291_p12 = scmp.ne.s32.totalorder %s365_s21, %s2290_s2  ;;  %s2295_s20 = sshll.u32 %s2400_s26, 4  ;;  %s2296_s20 = int_to_ptr.vmem [resolvable:$false] %s2295_s20 }
  0xb5   : > { %s2297_s24 = scalar_lea.vmem %s2296_s20, 256  ;;  %p2298_p9 = scmp.lt.s32.totalorder %s365_s21, %s2296_s20 }
  0xb6   : > { %p2293_p13 = pnand %p2291_p12, %p2247_p8  ;;  %p2299_p6 = scmp.lt.s32.totalorder %s2297_s24, %s2290_s2 }
  0xb8   : > { %p2294_p7 = pneg %p2293_p13  ;;  %p2300_p0 = por %p2299_p6, %p2298_p9 }
  0xba   : > { %p2301_p2 = pnand %p2300_p0, %p2294_p7 }
  0xbc   : > { %2304 = shalt.err (!%p2301_p2)
}
  0xbd   : > { %1981 = dma.hbm_to_vmem [thread:$0]  (!%p2638_p4), %s2674_s29, 128, %s365_s21, %s354_s0  }
  0xbe   : > { %p2839_p3 = scmp.ne.s32.totalorder %s2825_s16, 0 }
  0xbf   : > { %s2702_s6 = sand.u32 (!%p2839_p3), 1, %s2379_s10   ;;  %p2840_p6 = scmp.ne.s32.totalorder (!%p2839_p3), %s2833_s18, 0 }
  0xc0   : > { %373 = sbr.rel (%p2839_p3) target bundleno = 1007 (0x3ef), region = 56  ;;  %s1650_s4 = sshll.u32 (!%p2839_p3), %s2702_s6, 5 }
  0xc1   : > { %s376_s9 = scalar_lea.sflag (!%p2839_p3), [#allocation3], %s2702_s6  ;;  %s2706_s27 = scalar_lea.vmem (!%p2839_p3), [#allocation2], %s1650_s4 }
  0xc7   : > { %2350 = dma.done.wait (%p2840_p6), %s376_s9, 512  }
  0xc8   : > { %2352 = vsyncadd (%p2840_p6), %s376_s9, 4294966784  ;;  %s384_s0 = sand.u32 1, %s2476_s15   ;;  %s1651_s16 = sshll.u32 %s2702_s6, 3 }
  0xc9   : > { %s385_s22 = scalar_lea.sflag [#allocation6], %s384_s0  ;;  %s388_s29 = scalar_lea.vmem [#allocation5], %s1651_s16 }
  0xca   : > { %2354 = dma.done.wait (%p2840_p6), %s385_s22, 128  }
  0xcb   : > { %2356 = vsyncadd (%p2840_p6), %s385_s22, 4294967168  ;;  %p2841_p4 = scmp.eq.s32.totalorder %s2476_s15, 0 }
  0xcd   : > { %2358 = dma.done.wait (%p2841_p4), [#allocation6], 512   ;;  %p2842_p8 = pmov %p2841_p4 }
  0xce   : > { %p2843_p5 = pmov %p2841_p4 }
  0xcf   : > { %2360 = vsyncadd (%p2842_p8), [#allocation6], 4294966784 }
  0xd0   : > { %2362 = dma.done.wait (%p2843_p5), [#allocation9], 12288   ;;  %p2844_p10 = pmov %p2841_p4 }
  0xd1   : > { %p2845_p1 = pmov %p2841_p4 }
  0xd2   : > { %2364 = vsyncadd (%p2844_p10), [#allocation9], 4294955008 }
  0xd3   : > { %2366 = dma.done.wait (%p2845_p1), [#allocation12], 1024   ;;  %p2846_p11 = pmov %p2845_p1 }
  0xd4   : > { %v2401_v0 = vmov 0.0   ;;  %vm466_vm0 = vcmask 1040384   ;;  %vm2402_vm1 = vmmov 1   ;;  %v447_v1 = vld [vmem:[#allocation7 + $0x8] sm:$0xff]  ;;  %v449_v2 = vld [vmem:[#allocation7 + $0x18] sm:$0x1]  ;;  %v452_v56 = vlaneseq }
  0xd5   : > { %2368 = vsyncadd (%p2846_p11), [#allocation12], 4294966272  ;;  %537 = vmatprep.mubr.f32.mxu0 %v2401_v0  ;;  %v446_v3 = vld [vmem:[#allocation7] sm:$0xff]  ;;  %v1902_v4 = vpack.c.bf16 %v449_v2, %v447_v1  ;;  %v448_v5 = vld [vmem:[#allocation7 + $0x10] sm:$0x1]  ;;  %vm462_vm3 = vcmask 72704  }
  0xd6   : > { %vm1903_vm2 = vmpackc.low %vm466_vm0, %vm2402_vm1  ;;  %v1905_v6 = vpack.c.bf16 %v448_v5, %v446_v3  ;;  %v445_v7 = vld [vmem:[%s388_s29] sm:$0xff]  ;;  %v574_v8 = vld [vmem:[#allocation8 + $0x80] sm:$0xff]  ;;  %v453_v57 = vshrl.u32 %v452_v56, 7  ;;  %vm2403_vm4 = vmmov 0   ;;  %s1746_s26 = sshll.u32 %s2476_s15, 7  ;;  %s443_s20 = scalar_lea.vmem [#allocation13], %s1651_s16 }
  0xd7   : > { %1904 = vmatprep.subr.msk.bf16.mxu0 %vm1903_vm2, %v1902_v4  ;;  %v575_v9 = vld [vmem:[#allocation8 + $0x88] sm:$0xff]  ;;  %v558_v11 = vld [vmem:[#allocation8] sm:$0xff]  ;;  %v576_v14 = vld [vmem:[#allocation8 + $0x90] sm:$0xff]  ;;  %s1506_s24 = sshll.u32 %s443_s20, 4  ;;  %s1493_s22 = scalar_lea.sflag [#allocation4], %s2702_s6  ;;  %s2763_s24 = int_to_ptr.vmem [resolvable:$true] %s1506_s24 }
  0xd8   : > { %1907 = vmatpush1.bf16.msk.msra.mxu0 %vm1903_vm2, %v1905_v6  ;;  %v1908_v10 = vpack.c.bf16 %v575_v9, %v574_v8  ;;  %v559_v12 = vld [vmem:[#allocation8 + $0x8] sm:$0xff]  ;;  %v577_v15 = vld [vmem:[#allocation8 + $0x98] sm:$0xff]  ;;  %v560_v17 = vld [vmem:[#allocation8 + $0x10] sm:$0xff]  ;;  %v454_v58 = vsub.s32 0, %v453_v57  ;;  %v458_v60 = vsub.s32 1, %v453_v57  ;;  %s2305_s29 = scalar_lea.vmem %s2763_s24, 128 }
  0xd9   : > { %1882 = vmatprep.subr.bf16.mxu0 %v2401_v0  ;;  %v1910_v13 = vpack.c.bf16 %v559_v12, %v558_v11  ;;  %v1912_v16 = vpack.c.bf16 %v577_v15, %v576_v14  ;;  %v561_v18 = vld [vmem:[#allocation8 + $0x18] sm:$0xff]  ;;  %v578_v20 = vld [vmem:[#allocation8 + $0xa0] sm:$0xff]  ;;  %v579_v21 = vld [vmem:[#allocation8 + $0xa8] sm:$0xff]  ;;  %p2306_p12 = scmp.ne.s32.totalorder %s2763_s24, %s2305_s29  ;;  %p2848_p13 = scmp.ne.s32.totalorder %s2834_s23, 0 }
  0xda   : > { %1909 = vmatprep.subr.bf16.mxu1 %v1908_v10  ;;  %v1914_v19 = vpack.c.bf16 %v561_v18, %v560_v17  ;;  %v1916_v22 = vpack.c.bf16 %v579_v21, %v578_v20  ;;  %v562_v23 = vld [vmem:[#allocation8 + $0x20] sm:$0xff]  ;;  %v563_v24 = vld [vmem:[#allocation8 + $0x28] sm:$0xff]  ;;  %v580_v26 = vld [vmem:[#allocation8 + $0xb0] sm:$0xff]  ;;  %s2404_s15 = smov [#allocation13]  }
  0xdb   : > { %1659 = vmatmul.mubr.msk.f32.vlgmr.msra.gmra.mrb[0].mxu0 %vm462_vm3, %v445_v7  ;;  %1911 = vmatpush3.bf16.msra.mxu1 %v1910_v13  ;;  %v1918_v25 = vpack.c.bf16 %v563_v24, %v562_v23  ;;  %v581_v27 = vld [vmem:[#allocation8 + $0xb8] sm:$0xff]  ;;  %v564_v29 = vld [vmem:[#allocation8 + $0x30] sm:$0xff]  ;;  %v582_v32 = vld [vmem:[#allocation8 + $0xc0] sm:$0xff]  ;;  %p2307_p7 = pnand %p2306_p12, %p2848_p13  ;;  %s2309_s16 = sshll.u32 %s2404_s15, 4  ;;  %s2310_s16 = int_to_ptr.vmem [resolvable:$false] %s2309_s16 }
  0xdc   : > { %1913 = vmatprep.subr.bf16.mxu1 %v1912_v16  ;;  %v1920_v28 = vpack.c.bf16 %v581_v27, %v580_v26  ;;  %v565_v30 = vld [vmem:[#allocation8 + $0x38] sm:$0xff]  ;;  %v583_v33 = vld [vmem:[#allocation8 + $0xc8] sm:$0xff]  ;;  %v566_v35 = vld [vmem:[#allocation8 + $0x40] sm:$0xff]  ;;  %1898 = vmatprep.mubr.msk.bf16.mxu0 %vm2403_vm4, %v2401_v0  ;;  %s2311_s18 = scalar_lea.vmem %s2310_s16, 256  ;;  %p2312_p0 = scmp.lt.s32.totalorder %s2763_s24, %s2310_s16 }
  0xdd   : > { %v1922_v31 = vpack.c.bf16 %v565_v30, %v564_v29  ;;  %v1924_v34 = vpack.c.bf16 %v583_v33, %v582_v32  ;;  %v567_v36 = vld [vmem:[#allocation8 + $0x48] sm:$0xff]  ;;  %v584_v38 = vld [vmem:[#allocation8 + $0xd0] sm:$0xff]  ;;  %v585_v39 = vld [vmem:[#allocation8 + $0xd8] sm:$0xff]  ;;  %p2308_p9 = pneg %p2307_p7  ;;  %p2313_p2 = scmp.lt.s32.totalorder %s2311_s18, %s2305_s29 }
  0xde   : > { %v1926_v37 = vpack.c.bf16 %v567_v36, %v566_v35  ;;  %v1928_v40 = vpack.c.bf16 %v585_v39, %v584_v38  ;;  %v568_v41 = vld [vmem:[#allocation8 + $0x50] sm:$0xff]  ;;  %v569_v42 = vld [vmem:[#allocation8 + $0x58] sm:$0xff]  ;;  %v586_v44 = vld [vmem:[#allocation8 + $0xe0] sm:$0xff] }
  0xdf   : > { %1915 = vmatpush3.bf16.msra.mxu1 %v1914_v19  ;;  %v1930_v43 = vpack.c.bf16 %v569_v42, %v568_v41  ;;  %v587_v45 = vld [vmem:[#allocation8 + $0xe8] sm:$0xff]  ;;  %v570_v47 = vld [vmem:[#allocation8 + $0x60] sm:$0xff]  ;;  %v588_v50 = vld [vmem:[#allocation8 + $0xf0] sm:$0xff]  ;;  %p2314_p3 = por %p2313_p2, %p2312_p0 }
  0xe0   : > { %1917 = vmatprep.subr.bf16.mxu1 %v1916_v22  ;;  %v1932_v46 = vpack.c.bf16 %v587_v45, %v586_v44  ;;  %v571_v48 = vld [vmem:[#allocation8 + $0x68] sm:$0xff]  ;;  %v589_v51 = vld [vmem:[#allocation8 + $0xf8] sm:$0xff]  ;;  %v572_v53 = vld [vmem:[#allocation8 + $0x70] sm:$0xff] }
  0xe1   : > { %v1934_v49 = vpack.c.bf16 %v571_v48, %v570_v47  ;;  %v1936_v52 = vpack.c.bf16 %v589_v51, %v588_v50  ;;  %v573_v54 = vld [vmem:[#allocation8 + $0x78] sm:$0xff]  ;;  %v450_v59 = vld [vmem:[%s2808_s3] sm:$0x3]  ;;  %v2041_v14 = vld [vmem:[#allocation10 + $0x40] sm:$0xff]   ;;  %p2315_p6 = pnand %p2314_p3, %p2308_p9 }
  0xe2   : > { %v1938_v55 = vpack.c.bf16 %v573_v54, %v572_v53  ;;  %v455_v61 = vrot.slane %v450_v59, %v454_v58  ;;  %v459_v62 = vrot.slane %v450_v59, %v458_v60  ;;  %v2042_v15 = vld [vmem:[#allocation10] sm:$0xff]   ;;  %v2044_v17 = vld [vmem:[#allocation10 + $0x48] sm:$0xff]   ;;  %v2047_v20 = vld [vmem:[#allocation10 + $0x50] sm:$0xff]  }
  0xe3   : > { %1919 = vmatpush3.bf16.msra.mxu1 %v1918_v25  ;;  %v2043_v16 = vld [vmem:[#allocation11] sm:$0xff]   ;;  %v2045_v18 = vld [vmem:[#allocation10 + $0x8] sm:$0xff]   ;;  %v2048_v21 = vld [vmem:[#allocation10 + $0x10] sm:$0xff]  }
  0xe4   : > { %1921 = vmatprep.subr.bf16.mxu1 %v1920_v28  ;;  %1883 = vmatpush3.bf16.msra.mxu0 %v2043_v16  ;;  %v2046_v19 = vld [vmem:[#allocation11 + $0x8] sm:$0xff]   ;;  %v2049_v22 = vld [vmem:[#allocation11 + $0x10] sm:$0xff]   ;;  %v2050_v23 = vld [vmem:[#allocation10 + $0x58] sm:$0xff]  }
  0xe5   : > { %1884 = vmatprep.subr.bf16.mxu0 %v2401_v0  ;;  %v2051_v24 = vld [vmem:[#allocation10 + $0x18] sm:$0xff]   ;;  %v2053_v26 = vld [vmem:[#allocation10 + $0x60] sm:$0xff]   ;;  %v2056_v29 = vld [vmem:[#allocation10 + $0x68] sm:$0xff]  }
  0xe6   : > { %v2052_v25 = vld [vmem:[#allocation11 + $0x18] sm:$0xff]   ;;  %v2054_v27 = vld [vmem:[#allocation10 + $0x20] sm:$0xff]   ;;  %v2057_v30 = vld [vmem:[#allocation10 + $0x28] sm:$0xff]  }
  0xe7   : > { %1923 = vmatpush3.bf16.msra.mxu1 %v1922_v31  ;;  %v2055_v28 = vld [vmem:[#allocation11 + $0x20] sm:$0xff]   ;;  %v2058_v31 = vld [vmem:[#allocation11 + $0x28] sm:$0xff]   ;;  %v2059_v32 = vld [vmem:[#allocation10 + $0x70] sm:$0xff]  }
  0xe8   : > { %1925 = vmatprep.subr.bf16.mxu1 %v1924_v34  ;;  %1885 = vmatpush3.bf16.msra.mxu0 %v2046_v19  ;;  %v2060_v33 = vld [vmem:[#allocation10 + $0x30] sm:$0xff]   ;;  %v2062_v35 = vld [vmem:[#allocation10 + $0x78] sm:$0xff]   ;;  %v2067_v41 = vld [vmem:[#allocation10 + $0xc0] sm:$0xff]  }
  0xe9   : > { %1886 = vmatprep.subr.bf16.mxu0 %v2401_v0  ;;  %v2061_v34 = vld [vmem:[#allocation11 + $0x30] sm:$0xff]   ;;  %v2063_v36 = vld [vmem:[#allocation10 + $0x38] sm:$0xff]   ;;  %v2069_v42 = vld [vmem:[#allocation10 + $0x140] sm:$0xff]  }
  0xea   : > { %v2064_v38 = vld [vmem:[#allocation11 + $0x38] sm:$0xff]   ;;  %v2073_v44 = vld [vmem:[#allocation10 + $0x148] sm:$0xff]   ;;  %v2078_v47 = vld [vmem:[#allocation10 + $0x110] sm:$0xff]  }
  0xeb   : > { %1927 = vmatpush3.bf16.msra.mxu1 %v1926_v37  ;;  %v674_v37 = vld [vmem:[%s2706_s27] sm:$0xff]  ;;  %v2074_v45 = vld [vmem:[#allocation10 + $0x108] sm:$0xff]   ;;  %v2081_v48 = vld [vmem:[#allocation10 + $0x158] sm:$0xff]  }
  0xec   : > { %1929 = vmatprep.subr.bf16.mxu1 %v1928_v40  ;;  %1887 = vmatpush3.bf16.msra.mxu0 %v2049_v22  ;;  %v1673_v39 = vcombine.high %v674_v37, %v674_v37  ;;  %v1672_v40 = vcombine.low %v674_v37, %v674_v37  ;;  %v2085_v50 = vld [vmem:[#allocation10 + $0x160] sm:$0xff]   ;;  %v2089_v51 = vld [vmem:[#allocation10 + $0x168] sm:$0xff]   ;;  %v2093_v53 = vld [vmem:[#allocation10 + $0x170] sm:$0xff]  }
  0xed   : > { %1888 = vmatprep.subr.bf16.mxu0 %v2401_v0  ;;  %v2094_v54 = vld [vmem:[#allocation10 + $0x130] sm:$0xff]   ;;  %v2100_v56 = vld [vmem:[#allocation10 + $0x138] sm:$0xff]   ;;  %v676_v57 = vld [vmem:[%s2706_s27 + $0x10] sm:$0xff] }
  0xee   : > { %v1677_v58 = vcombine.high %v676_v57, %v676_v57  ;;  %v1676_v59 = vcombine.low %v676_v57, %v676_v57  ;;  %v2080_v16 = vld [vmem:[#allocation10 + $0x98] sm:$0xff]   ;;  %v2087_v19 = vld [vmem:[#allocation10 + $0xe8] sm:$0xff]   ;;  %v2092_v22 = vld [vmem:[#allocation10 + $0xb0] sm:$0xff]  }
  0xef   : > { %1931 = vmatpush3.bf16.msra.mxu1 %v1930_v43  ;;  %v2070_v43 = vld [vmem:[#allocation10 + $0x100] sm:$0xff]  }
  0xf0   : > { %1933 = vmatprep.subr.bf16.mxu1 %v1932_v46  ;;  %1889 = vmatpush3.bf16.msra.mxu0 %v2052_v25  ;;  %v2077_v46 = vld [vmem:[#allocation10 + $0x150] sm:$0xff]   ;;  %v2101_v25 = vld [vmem:[#allocation10 + $0x1c0] sm:$0xff]  }
  0xf1   : > { %1890 = vmatprep.subr.bf16.mxu0 %v2401_v0  ;;  %v2112_v37 = vld [vmem:[#allocation10 + $0x1a0] sm:$0xff]  }
  0xf3   : > { %1935 = vmatpush3.bf16.msra.mxu1 %v1934_v49  ;;  %v2082_v49 = vld [vmem:[#allocation10 + $0x118] sm:$0xff]  }
  0xf4   : > { %1937 = vmatprep.subr.bf16.mxu1 %v1936_v52  ;;  %1891 = vmatpush3.bf16.msra.mxu0 %v2055_v28  ;;  %v2090_v52 = vld [vmem:[#allocation10 + $0x128] sm:$0xff]   ;;  %v2104_v28 = vld [vmem:[#allocation10 + $0x180] sm:$0xff]  }
  0xf5   : > { %1892 = vmatprep.subr.bf16.mxu0 %v2401_v0 }
  0xf7   : > { %1939 = vmatpush3.bf16.msra.mxu1 %v1938_v55  ;;  %v2097_v55 = vld [vmem:[#allocation10 + $0x178] sm:$0xff]  }
  0xf8   : > { %1794 = vmatprep.subr.bf16.mxu1 %v2041_v14  ;;  %1893 = vmatpush3.bf16.msra.mxu0 %v2058_v31  ;;  %v2076_v14 = vld [vmem:[#allocation10 + $0x90] sm:$0xff]   ;;  %v2106_v31 = vld [vmem:[#allocation10 + $0x188] sm:$0xff]  }
  0xf9   : > { %1894 = vmatprep.subr.bf16.mxu0 %v2401_v0 }
  0xfc   : > { %1895 = vmatpush3.bf16.msra.mxu0 %v2061_v34  ;;  %v2109_v34 = vld [vmem:[#allocation10 + $0x1d8] sm:$0xff]  }
  0xfd   : > { %1896 = vmatprep.subr.bf16.mxu0 %v2401_v0  ;;  %v2086_v0 = vld [vmem:[#allocation10 + $0x120] sm:$0xff]  }
 0x100   : > { %1897 = vmatpush3.bf16.msra.mxu0 %v2064_v38  ;;  %v2113_v38 = vld [vmem:[#allocation10 + $0x1e8] sm:$0xff]  }
 0x101   : > { %1816 = vmatprep.subr.bf16.mxu0 %v2067_v41  ;;  %v2116_v41 = vld [vmem:[#allocation10 + $0x1b0] sm:$0xff]  }
 0x1ae   : > { %v539_v63 = vpop.f32.mrb[0].mxu0 }
 0x1af   : > { %v540_v1 = vadd.f32 %v539_v63, %v455_v61  ;;  %v541_v2 = vpop.f32.mrb[1].mxu0  ;;  %v1662_v61 = vld [vmem:[%s2810_s5] ss:$0 sm:$0xff] }
 0x1b0   : > { %v542_v3 = vadd.f32 %v541_v2, %v459_v62 }
 0x1b1   : > { %v1660_v4 = vmul.f32 -1.442695, %v540_v1 }
 0x1b2   : > { %v1661_v5 = vmul.f32 -1.442695, %v542_v3 }
 0x1b3   : > { %2121 = vpow2.f32 %v1660_v4 }
 0x1b4   : > { %2123 = vpow2.f32 %v1661_v5  ;;  %v675_v5 = vld [vmem:[%s2706_s27 + $0x8] sm:$0xff] }
 0x1bd   : > { %v2122_v6 = vpop.eup %2121 }
 0x1be   : > { %v2124_v7 = vpop.eup %2123  ;;  %v550_v8 = vadd.f32 1.0, %v2122_v6 }
 0x1bf   : > { %v551_v9 = vadd.f32 1.0, %v2124_v7 }
 0x1c0   : > { %2125 = vrcp.f32 %v550_v8  ;;  %v2068_v8 = vld [vmem:[#allocation10 + $0x80] sm:$0xff]  }
 0x1c1   : > { %2127 = vrcp.f32 %v551_v9  ;;  %v1675_v9 = vcombine.high %v675_v5, %v675_v5 }
 0x1ca   : > { %v2126_v10 = vpop.eup %2125 }
 0x1cb   : > { %v2128_v11 = vpop.eup %2127  ;;  %v556_v13 = vmul.f32 %v2126_v10, %v540_v1 }
 0x1cc   : > { %v557_v12 = vmul.f32 %v2128_v11, %v542_v3  ;;  %v2071_v11 = vld [vmem:[#allocation10 + $0xc8] sm:$0xff]  }
 0x1ce   : > { %661 = vmatprep.mubr.f32.mxu1 %v557_v12  ;;  %v2072_v12 = vld [vmem:[#allocation10 + $0x88] sm:$0xff]  }
 0x1cf   : > { %662 = vmatmul.mubr.f32.vlgmr.msra.gmra.mrb[0].mxu1 %v556_v13  ;;  %v2075_v13 = vld [vmem:[#allocation10 + $0xd0] sm:$0xff]  }
 0x1d0   : > { %1795 = vmatpush3.bf16.msra.mxu1 %v2042_v15  ;;  %1355 = vmatprep.mubr.bf16.mxu1 %v1673_v39  ;;  %v2079_v15 = vld [vmem:[#allocation10 + $0xd8] sm:$0xff]   ;;  %v2114_v39 = vld [vmem:[#allocation10 + $0x1a8] sm:$0xff]  }
 0x1d1   : > { %1796 = vmatprep.subr.bf16.mxu1 %v2044_v17  ;;  %v2083_v17 = vld [vmem:[#allocation10 + $0xe0] sm:$0xff]  }
 0x1d4   : > { %1797 = vmatpush3.bf16.msra.mxu1 %v2045_v18  ;;  %v2084_v18 = vld [vmem:[#allocation10 + $0xa0] sm:$0xff]  }
 0x1d5   : > { %1798 = vmatprep.subr.bf16.mxu1 %v2047_v20  ;;  %v2088_v20 = vld [vmem:[#allocation10 + $0xa8] sm:$0xff]  }
 0x1d8   : > { %1799 = vmatpush3.bf16.msra.mxu1 %v2048_v21  ;;  %v2091_v21 = vld [vmem:[#allocation10 + $0xf0] sm:$0xff]  }
 0x1d9   : > { %1800 = vmatprep.subr.bf16.mxu1 %v2050_v23  ;;  %v2095_v23 = vld [vmem:[#allocation10 + $0xf8] sm:$0xff]  }
 0x1dc   : > { %1801 = vmatpush3.bf16.msra.mxu1 %v2051_v24  ;;  %v2096_v24 = vld [vmem:[#allocation10 + $0xb8] sm:$0xff]  }
 0x1dd   : > { %1802 = vmatprep.subr.bf16.mxu1 %v2053_v26  ;;  %v677_v26 = vld [vmem:[%s2706_s27 + $0x18] sm:$0xff]  ;;  %s2847_s27 = sld [smem:[#allocation24_spill]] }
 0x1e0   : > { %1803 = vmatpush3.bf16.msra.mxu1 %v2054_v27  ;;  %v1674_v27 = vcombine.low %v675_v5, %v675_v5 }
 0x1e1   : > { %1804 = vmatprep.subr.bf16.mxu1 %v2056_v29  ;;  %v1679_v29 = vcombine.high %v677_v26, %v677_v26 }
 0x1e3   : > { %s2761_s0 = scalar_lea.hbm %s2847_s27, %s1746_s26 }
 0x1e4   : > { %1805 = vmatpush3.bf16.msra.mxu1 %v2057_v30  ;;  %v2105_v30 = vld [vmem:[#allocation10 + $0x1c8] sm:$0xff]  }
 0x1e5   : > { %1806 = vmatprep.subr.bf16.mxu1 %v2059_v32  ;;  %v2107_v32 = vld [vmem:[#allocation10 + $0x1d0] sm:$0xff]  }
 0x1e8   : > { %1807 = vmatpush3.bf16.msra.mxu1 %v2060_v33  ;;  %v2108_v33 = vld [vmem:[#allocation10 + $0x190] sm:$0xff]  }
 0x1e9   : > { %1808 = vmatprep.subr.bf16.mxu1 %v2062_v35  ;;  %v2110_v35 = vld [vmem:[#allocation10 + $0x198] sm:$0xff]  }
 0x1ec   : > { %1809 = vmatpush3.bf16.msra.mxu1 %v2063_v36  ;;  %v2111_v36 = vld [vmem:[#allocation10 + $0x1e0] sm:$0xff]  }
 0x1ed   : > { %1838 = vmatprep.subr.bf16.mxu1 %v2069_v42  ;;  %v2117_v42 = vld [vmem:[#allocation10 + $0x1f8] sm:$0xff]  }
 0x1ef   : > { %1356 = vmatmul.mubr.bf16.vlgmr.msra.gmra.mrb[4].mxu1 %v1672_v40  ;;  %v2115_v40 = vld [vmem:[#allocation10 + $0x1f0] sm:$0xff]  }
 0x1f0   : > { %1839 = vmatpush3.bf16.msra.mxu1 %v2070_v43  ;;  %1435 = vmatprep.mubr.bf16.mxu1 %v1677_v58  ;;  %v2118_v43 = vld [vmem:[#allocation10 + $0x1b8] sm:$0xff]  }
 0x1f1   : > { %1840 = vmatprep.subr.bf16.mxu1 %v2073_v44  ;;  %v1678_v44 = vcombine.low %v677_v26, %v677_v26 }
 0x1f4   : > { %1841 = vmatpush3.bf16.msra.mxu1 %v2074_v45 }
 0x1f5   : > { %1842 = vmatprep.subr.bf16.mxu1 %v2077_v46 }
 0x1f8   : > { %1843 = vmatpush3.bf16.msra.mxu1 %v2078_v47 }
 0x1f9   : > { %1844 = vmatprep.subr.bf16.mxu1 %v2081_v48 }
 0x1fc   : > { %1845 = vmatpush3.bf16.msra.mxu1 %v2082_v49 }
 0x1fd   : > { %1846 = vmatprep.subr.bf16.mxu1 %v2085_v50 }
 0x200   : > { %1847 = vmatpush3.bf16.msra.mxu1 %v2086_v0 }
 0x201   : > { %1848 = vmatprep.subr.bf16.mxu1 %v2089_v51 }
 0x204   : > { %1849 = vmatpush3.bf16.msra.mxu1 %v2090_v52 }
 0x205   : > { %1850 = vmatprep.subr.bf16.mxu1 %v2093_v53 }
 0x208   : > { %1851 = vmatpush3.bf16.msra.mxu1 %v2094_v54 }
 0x209   : > { %1852 = vmatprep.subr.bf16.mxu1 %v2097_v55 }
 0x20c   : > { %1853 = vmatpush3.bf16.msra.mxu1 %v2100_v56 }
 0x20f   : > { %1436 = vmatmul.mubr.bf16.vlgmr.msra.gmra.mrb[8].mxu1 %v1676_v59 }
 0x2a2   : > { %v1782_v60 = vpop.f32.mrb[0].mxu1 }
 0x2a3   : > { %v1783_v62 = vpop.f32.mrb[1].mxu1 }
 0x2a4   : > { %v1784_v63 = vadd.f32 %v1783_v62, %v1782_v60 }
 0x2a6   : > { %v664_v1 = vadd.f32 %v1784_v63, %v1662_v61 }
 0x2a8   : > { %v1663_v2 = vmul.f32 -1.442695, %v664_v1 }
 0x2aa   : > { %2129 = vpow2.f32 %v1663_v2 }
 0x2b4   : > { %v2130_v3 = vpop.eup %2129 }
 0x2b5   : > { %v670_v4 = vadd.f32 1.0, %v2130_v3 }
 0x2b7   : > { %2131 = vrcp.f32 %v670_v4 }
 0x2c1   : > { %v2132_v6 = vpop.eup %2131 }
 0x2c2   : > { %v673_v7 = vmul.f32 %v2132_v6, %v664_v1  ;;  %v1810_v45 = vpop.f32.mrb[4].mxu1 }
 0x2c3   : > { %v1811_v46 = vpop.f32.mrb[5].mxu1 }
 0x2c4   : > { %v806_v10 = vpack.c.bf16 %v673_v7, %v673_v7  ;;  %v1812_v47 = vadd.f32 %v1811_v46, %v1810_v45  ;;  %v1813_v48 = vpop.f32.mrb[6].mxu1  ;;  %v1744_v7 = vld [vmem:[%s2813_s8] ss:$0 sm:$0xff] }
 0x2c5   : > { %v1814_v49 = vpop.f32.mrb[7].mxu1 }
 0x2c6   : > { %1899 = vmatmul.mubr.bf16.vlgmr.msra.gmra.mrb[4].mxu0 %v806_v10 }
 0x2c7   : > { %1817 = vmatpush3.bf16.msra.mxu0 %v2068_v8  ;;  %1395 = vmatprep.mubr.bf16.mxu0 %v1675_v9 }
 0x2c8   : > { %1818 = vmatprep.subr.bf16.mxu0 %v2071_v11 }
 0x2cb   : > { %1819 = vmatpush3.bf16.msra.mxu0 %v2072_v12 }
 0x2cc   : > { %1820 = vmatprep.subr.bf16.mxu0 %v2075_v13 }
 0x2cf   : > { %1821 = vmatpush3.bf16.msra.mxu0 %v2076_v14 }
 0x2d0   : > { %1822 = vmatprep.subr.bf16.mxu0 %v2079_v15 }
 0x2d3   : > { %1823 = vmatpush3.bf16.msra.mxu0 %v2080_v16 }
 0x2d4   : > { %1824 = vmatprep.subr.bf16.mxu0 %v2083_v17 }
 0x2d7   : > { %1825 = vmatpush3.bf16.msra.mxu0 %v2084_v18 }
 0x2d8   : > { %1826 = vmatprep.subr.bf16.mxu0 %v2087_v19 }
 0x2db   : > { %1827 = vmatpush3.bf16.msra.mxu0 %v2088_v20 }
 0x2dc   : > { %1828 = vmatprep.subr.bf16.mxu0 %v2091_v21 }
 0x2df   : > { %1829 = vmatpush3.bf16.msra.mxu0 %v2092_v22 }
 0x2e0   : > { %1830 = vmatprep.subr.bf16.mxu0 %v2095_v23 }
 0x2e2   : > { %v1854_v50 = vpop.f32.mrb[8].mxu1 }
 0x2e3   : > { %1831 = vmatpush3.bf16.msra.mxu0 %v2096_v24  ;;  %v1855_v0 = vpop.f32.mrb[9].mxu1 }
 0x2e4   : > { %1860 = vmatprep.subr.bf16.mxu0 %v2101_v25  ;;  %v1856_v51 = vadd.f32 %v1855_v0, %v1854_v50  ;;  %v1857_v52 = vpop.f32.mrb[10].mxu1 }
 0x2e5   : > { %v1858_v53 = vpop.f32.mrb[11].mxu1 }
 0x2e6   : > { %1396 = vmatmul.mubr.bf16.vlgmr.msra.gmra.mrb[8].mxu0 %v1674_v27 }
 0x2e7   : > { %1861 = vmatpush3.bf16.msra.mxu0 %v2104_v28  ;;  %1475 = vmatprep.mubr.bf16.mxu0 %v1679_v29 }
 0x2e8   : > { %1862 = vmatprep.subr.bf16.mxu0 %v2105_v30 }
 0x2eb   : > { %1863 = vmatpush3.bf16.msra.mxu0 %v2106_v31 }
 0x2ec   : > { %1864 = vmatprep.subr.bf16.mxu0 %v2107_v32 }
 0x2ef   : > { %1865 = vmatpush3.bf16.msra.mxu0 %v2108_v33 }
 0x2f0   : > { %1866 = vmatprep.subr.bf16.mxu0 %v2109_v34 }
 0x2f3   : > { %1867 = vmatpush3.bf16.msra.mxu0 %v2110_v35 }
 0x2f4   : > { %1868 = vmatprep.subr.bf16.mxu0 %v2111_v36 }
 0x2f7   : > { %1869 = vmatpush3.bf16.msra.mxu0 %v2112_v37 }
 0x2f8   : > { %1870 = vmatprep.subr.bf16.mxu0 %v2113_v38 }
 0x2fb   : > { %1871 = vmatpush3.bf16.msra.mxu0 %v2114_v39 }
 0x2fc   : > { %1872 = vmatprep.subr.bf16.mxu0 %v2115_v40 }
 0x2ff   : > { %1873 = vmatpush3.bf16.msra.mxu0 %v2116_v41 }
 0x300   : > { %1874 = vmatprep.subr.bf16.mxu0 %v2117_v42 }
 0x303   : > { %1875 = vmatpush3.bf16.msra.mxu0 %v2118_v43 }
 0x306   : > { %1476 = vmatmul.mubr.bf16.vlgmr.msra.gmra.mrb[12].mxu0 %v1678_v44 }
 0x399   : > { %v905_v54 = vpop.f32.mrb[4].mxu0 }
 0x39a   : > { %v1358_v55 = vadd.f32 %v1812_v47, %v905_v54  ;;  %v1900_v56 = vpop.f32.mrb[5].mxu0 }
 0x39b   : > { %v908_v57 = vpop.f32.mrb[6].mxu0 }
 0x39c   : > { %v1901_v58 = vpop.f32.mrb[7].mxu0 }
 0x3b9   : > { %v1832_v59 = vpop.f32.mrb[8].mxu0 }
 0x3ba   : > { %v1833_v60 = vpop.f32.mrb[9].mxu0 }
 0x3bb   : > { %v1834_v61 = vadd.f32 %v1833_v60, %v1832_v59  ;;  %v1835_v62 = vpop.f32.mrb[10].mxu0 }
 0x3bc   : > { %v1836_v63 = vpop.f32.mrb[11].mxu0 }
 0x3bd   : > { %v1398_v1 = vadd.f32 %v1834_v61, %v1358_v55 }
 0x3bf   : > { %v1438_v2 = vadd.f32 %v1856_v51, %v1398_v1 }
 0x3d9   : > { %v1876_v3 = vpop.f32.mrb[12].mxu0 }
 0x3da   : > { %v1877_v4 = vpop.f32.mrb[13].mxu0 }
 0x3db   : > { %v1878_v5 = vadd.f32 %v1877_v4, %v1876_v3  ;;  %v1879_v6 = vpop.f32.mrb[14].mxu0 }
 0x3dc   : > { %v1880_v8 = vpop.f32.mrb[15].mxu0 }
 0x3dd   : > { %v1478_v9 = vadd.f32 %v1878_v5, %v1438_v2 }
 0x3df   : > { %v1490_v10 = vadd.f32 %v1744_v7, %v1478_v9 }
 0x3e1   : > { %1491 = vst [vmem:[%s443_s20] sm:$0xff] %v1490_v10 }
 0x3e2   : > { %2318 = shalt.err (!%p2315_p6)
}
 0x3e3   : > { %s2319_s6 = scalar_lea.hbm %s2761_s0, 128  ;;  %s2323_s17 = scalar_lea.hbm %s2847_s27, 256 }
 0x3e4   : > { %p2320_p4 = scmp.ne.s32.totalorder %s2761_s0, %s2319_s6  ;;  %p2324_p10 = scmp.lt.u32.totalorder %s2761_s0, %s2847_s27 }
 0x3e5   : > { %p2325_p1 = scmp.lt.u32.totalorder %s2323_s17, %s2319_s6  ;;  %p2327_p12 = scmp.lt.u32.totalorder %s2319_s6, %s2761_s0 }
 0x3e6   : > { %p2321_p8 = pnand %p2320_p4, %p2848_p13 }
 0x3e7   : > { %p2326_p11 = por %p2325_p1, %p2324_p10 }
 0x3e8   : > { %p2322_p5 = pneg %p2321_p8 }
 0x3e9   : > { %p2328_p7 = por %p2327_p12, %p2326_p11 }
 0x3eb   : > { %p2329_p9 = pnand %p2328_p7, %p2322_p5 }
 0x3ed   : > { %2332 = shalt.err (!%p2329_p9)
}
 0x3ee   : > { %1960 = dma.vmem_to_hbm [thread:$0]  (%p2848_p13), %s2763_s24, 128, %s2761_s0, %s1493_s22  }
 0x3ef PF: > { %s1518_s26 = sand.u32 1, %s2375_s30   ;;  %p2849_p0 = scmp.ne.s32.totalorder %s2835_s28, 0 }
 0x3f0   : > { %p2850_p2 = scmp.ge.s32.totalorder %s2387_s12, 2  ;;  %s1519_s20 = scalar_lea.sflag [#allocation4], %s1518_s26 }
 0x3f2   : > { %p1983_p3 = pnand %p2850_p2, %p2849_p0 }
 0x3f4   : > { %2370 = dma.done.wait (!%p1983_p3), %s1519_s20, 128  }
 0x3f5   : > { %2372 = vsyncadd (!%p1983_p3), %s1519_s20, 4294967168  ;;  %p27_p6 = scmp.ge.s32.totalorder %s2591_s19, 4   ;;  %s2851_s30 = smov %s2379_s10 }
 0x3f6   : > { %s2852_s10 = smov %s2383_s11  ;;  %s2853_s11 = smov %s2602_s25 }
 0x3f7   : > { %s2854_s12 = smov %s2591_s19  ;;  %29 = sbr.rel (!%p27_p6) target bundleno = 15 (0xf), region = 130 }
 0x3fe   :  { %1524 = vsyncpa [#allocation3], 1 }
 0x3ff   :  { %1526 = vsyncpa [#allocation3 + $0x1], 1 }
 0x400   :  { %1527 = vsyncpa [#allocation6], 1 }
 0x401   :  { %1529 = vsyncpa [#allocation6 + $0x1], 1 }
 0x402   :  { %1530 = vsyncpa [#allocation9], 1 }
 0x403   :  { %1531 = vsyncpa [#allocation12], 1 }
 0x404   :  { %1532 = vsyncpa [#allocation4], 1 }
 0x405   :  { %1534 = vsyncpa [#allocation4 + $0x1], 1 }

</bundles_post_ra>
